<compile_context>
chip_gen: v5e
topology: v5e:2x2
jax: 0.10.0
libtpu: 0.0.40
codegen_flags: <defaults>
</compile_context>

<pallas_src>
import functools

import jax
import jax.numpy as jnp
from jax.experimental import pallas as pl
from jax.experimental.pallas import tpu as pltpu


def _round_up(n: int, m: int) -> int:
    return ((n + m - 1) // m) * m


@functools.lru_cache(maxsize=None)
def _num_tensorcores() -> int:
    """2 TensorCores per chip on v7x; 1 on v5e/v6e."""
    try:
        kind = jax.devices()[0].device_kind.lower()
    except Exception:
        return 1
    return 2 if "v7" in kind else 1


# ------------------------------- kernel --------------------------------------

def _dueling_mlp_kernel(x_ref, w1_ref, b1_ref, w2_ref, b2_ref, w3_ref, b3_ref,
                        q_ref):
    # MXU input dtype follows the stored weight dtype (f32 by default, bf16
    # optional); accumulation / bias add / tanh stay f32 (safe on v5e).
    cdt = w1_ref.dtype
    x = x_ref[...].astype(cdt)
    h = jnp.tanh(
        jnp.dot(x, w1_ref[...], preferred_element_type=jnp.float32) + b1_ref[...])
    h = jnp.tanh(
        jnp.dot(h.astype(cdt), w2_ref[...], preferred_element_type=jnp.float32)
        + b2_ref[...])
    # Fused head: lanes [0, A) = v + adv_j, lane A = per-row advantage sum,
    # remaining padded lanes are exactly zero.  Lane-dense 128-wide store.
    q_ref[...] = (jnp.dot(h.astype(cdt), w3_ref[...],
                          preferred_element_type=jnp.float32)
                  + b3_ref[...]).astype(q_ref.dtype)


# ------------------------------- wrapper --------------------------------------

@functools.partial(jax.jit, static_argnames=("num_actions", "batch_tile"))
def dueling_dqn_forward(x, params, *, num_actions, batch_tile=1024):
    """x: (B, observation_dim) float32 -> Q-values (B, num_actions) float32."""
    w1, b1, w2, b2, w3, b3 = params
    B, D = x.shape
    H_pad = w1.shape[1]
    A_pad = w3.shape[1]

    # Batch tiling: big sublane-aligned tiles; pad the batch only to a multiple
    # of 8 and let the last tile be ragged (pl.cdiv grid).  Only split into >=2
    # grid steps when the chip actually has 2 TensorCores (v7x).
    B8 = _round_up(B, 8)
    tile = min(_round_up(batch_tile, 8), B8)
    if _num_tensorcores() >= 2 and pl.cdiv(B8, tile) < 2 and B8 >= 16:
        tile = _round_up(pl.cdiv(B8, 2), 8)
    num_tiles = pl.cdiv(B8, tile)

    xp = x.astype(jnp.float32)
    if B8 != B:
        xp = jnp.pad(xp, ((0, B8 - B), (0, 0)))   # batch pad only, no feature pad

    cost = pl.CostEstimate(
        flops=2 * B8 * (D * H_pad + H_pad * H_pad + H_pad * A_pad),
        transcendentals=2 * B8 * H_pad,
        bytes_accessed=4 * (B8 * D + B8 * A_pad
                            + D * H_pad + H_pad * H_pad + H_pad * A_pad
                            + 2 * H_pad + A_pad),
    )

    q_pre = pl.pallas_call(
        _dueling_mlp_kernel,
        out_shape=jax.ShapeDtypeStruct((B8, A_pad), jnp.float32),
        grid_spec=pltpu.PrefetchScalarGridSpec(
            num_scalar_prefetch=0,
            grid=(num_tiles,),
            in_specs=[
                pl.BlockSpec((tile, D), lambda i: (i, 0)),          # x tile (unpadded D)
                pl.BlockSpec((w1.shape[0], H_pad), lambda i: (0, 0)),  # w1 (D, 128)
                pl.BlockSpec((1, H_pad), lambda i: (0, 0)),          # b1 (f32)
                pl.BlockSpec((H_pad, H_pad), lambda i: (0, 0)),      # w2
                pl.BlockSpec((1, H_pad), lambda i: (0, 0)),          # b2 (f32)
                pl.BlockSpec((H_pad, A_pad), lambda i: (0, 0)),      # fused head w
                pl.BlockSpec((1, A_pad), lambda i: (0, 0)),          # fused head b
            ],
            out_specs=pl.BlockSpec((tile, A_pad), lambda i: (i, 0)),
        ),
        compiler_params=pltpu.CompilerParams(
            dimension_semantics=("parallel",)),
        cost_estimate=cost,
    )(xp, w1, b1, w2, b2, w3, b3)

    # adv.mean() in PyTorch is a mean over the WHOLE (B, num_actions) advantage
    # tensor.  Lane `num_actions` of q_pre holds each row's advantage sum, so
    # the global mean is a tiny fused XLA reduction here (no extra kernel, no
    # extra HBM round trip of q).
    adv_mean = jnp.sum(q_pre[:B, num_actions]) / (B * num_actions)
    return q_pre[:B, :num_actions] - adv_mean


# ----------------------------- parameters ------------------------------------

def init_raw_params(key, observation_dim, num_actions, hidden_size=64):
    """PyTorch nn.Linear default init: U(-1/sqrt(fan_in), +1/sqrt(fan_in))."""
    def linear(k, fan_in, fan_out):
        kw, kb = jax.random.split(k)
        bound = 1.0 / float(fan_in) ** 0.5
        w = jax.random.uniform(kw, (fan_in, fan_out), jnp.float32, -bound, bound)
        b = jax.random.uniform(kb, (fan_out,), jnp.float32, -bound, bound)
        return w, b

    k1, k2, k3, k4 = jax.random.split(key, 4)
    w1, b1 = linear(k1, observation_dim, hidden_size)
    w2, b2 = linear(k2, hidden_size, hidden_size)
    wa, ba = linear(k3, hidden_size, num_actions)   # advantage head
    wv, bv = linear(k4, hidden_size, 1)             # value head
    return dict(w1=w1, b1=b1, w2=w2, b2=b2, wa=wa, ba=ba, wv=wv, bv=bv)


def pack_params(raw, *, dtype=jnp.float32):
    """Zero-pad hidden/output dims to 128 lanes and fold the dueling algebra
    into one head slab.  Weights stored (in, out) in `dtype` (f32 default,
    bf16 optional); biases stay float32.  The observation dim is NOT padded."""
    D, H = raw["w1"].shape
    A = raw["wa"].shape[1]
    H_pad = _round_up(H, 128)
    A_pad = _round_up(A + 1, 128)   # +1 lane for the per-row advantage sum

    w1 = jnp.zeros((D, H_pad), jnp.float32).at[:, :H].set(raw["w1"])
    b1 = jnp.zeros((1, H_pad), jnp.float32).at[:, :H].set(raw["b1"][None, :])
    w2 = jnp.zeros((H_pad, H_pad), jnp.float32).at[:H, :H].set(raw["w2"])
    b2 = jnp.zeros((1, H_pad), jnp.float32).at[:, :H].set(raw["b2"][None, :])

    # Dueling algebra folded into the head:
    #   lane j < A : wa[:, j] + wv  (and ba[j] + bv)  ->  Q_pre = v + adv_j
    #   lane A     : sum_j wa[:, j] (and sum_j ba[j]) ->  per-row adv sum
    wq = raw["wa"] + raw["wv"]                       # (H, A)
    bq = raw["ba"] + raw["bv"][0]                    # (A,)
    ws = jnp.sum(raw["wa"], axis=1)                  # (H,)
    bs = jnp.sum(raw["ba"])                          # ()
    w3 = (jnp.zeros((H_pad, A_pad), jnp.float32)
          .at[:H, :A].set(wq)
          .at[:H, A].set(ws))
    b3 = (jnp.zeros((1, A_pad), jnp.float32)
          .at[:, :A].set(bq[None, :])
          .at[0, A].set(bs))
    return (w1.astype(dtype), b1, w2.astype(dtype), b2, w3.astype(dtype), b3)


def dueling_dqn_reference(x, raw):
    """Pure-JAX reference matching the PyTorch forward exactly."""
    h = jnp.tanh(x @ raw["w1"] + raw["b1"])
    h = jnp.tanh(h @ raw["w2"] + raw["b2"])
    adv = h @ raw["wa"] + raw["ba"]
    v = h @ raw["wv"] + raw["bv"]
    return v + adv - adv.mean()   # adv.mean() is over ALL elements (PyTorch)


# --------------------------------- demo ---------------------------------------

if __name__ == "__main__":
    observation_dim = 17
    num_actions = 6
    hidden_size = 64
    batch = 19          # not a multiple of 8: exercises batch padding

    key = jax.random.PRNGKey(0)
    key, kx = jax.random.split(key)
    x = jax.random.normal(kx, (batch, observation_dim), jnp.float32)

    raw = init_raw_params(key, observation_dim, num_actions, hidden_size)
    ref = dueling_dqn_reference(x, raw)

    params = pack_params(raw, dtype=jnp.float32)

    # Default large-tile path (single grid step at this batch).
    out = dueling_dqn_forward(x, params, num_actions=num_actions)
    out = jax.block_until_ready(out)
    assert out.shape == (batch, num_actions)
    assert jnp.allclose(out, ref, atol=2e-4, rtol=2e-4), "single-tile mismatch"

    # Small tile: multi-step grid with a ragged last tile (B8=24, tile=16).
    out2 = dueling_dqn_forward(x, params, num_actions=num_actions, batch_tile=16)
    out2 = jax.block_until_ready(out2)
    assert out2.shape == (batch, num_actions)
    assert jnp.allclose(out2, ref, atol=2e-4, rtol=2e-4), "multi-tile mismatch"

    # TODO(synk): the PyTorch module's optimizer (Adam) and predict() argmax are
    # training / host-side utilities and are not part of the Pallas forward.
    print("KERNEL_OK")
</pallas_src>

<mosaic_0001>
module attributes {stable_mosaic.version = 11 : i64} {
  func.func @_dueling_mlp_kernel(%arg0: i32, %arg1: memref<24x17xf32, #tpu.memory_space<vmem>>, %arg2: memref<17x128xf32, #tpu.memory_space<vmem>>, %arg3: memref<1x128xf32, #tpu.memory_space<vmem>>, %arg4: memref<128x128xf32, #tpu.memory_space<vmem>>, %arg5: memref<1x128xf32, #tpu.memory_space<vmem>>, %arg6: memref<128x128xf32, #tpu.memory_space<vmem>>, %arg7: memref<1x128xf32, #tpu.memory_space<vmem>>, %arg8: memref<24x128xf32, #tpu.memory_space<vmem>>) attributes {dimension_semantics = [#tpu.dimension_semantics<parallel>], iteration_bounds = array<i64: 1>, scalar_prefetch = 0 : i64, scratch_operands = 0 : i64, tpu.core_type = #tpu.core_type<tc>, window_params = [{transform_indices = @transform_0, window_bounds = array<i64: 24, 17>}, {pipeline_mode = #tpu.pipeline_mode<synchronous>, transform_indices = @transform_1, window_bounds = array<i64: 17, 128>}, {pipeline_mode = #tpu.pipeline_mode<synchronous>, transform_indices = @transform_2, window_bounds = array<i64: 1, 128>}, {pipeline_mode = #tpu.pipeline_mode<synchronous>, transform_indices = @transform_3, window_bounds = array<i64: 128, 128>}, {pipeline_mode = #tpu.pipeline_mode<synchronous>, transform_indices = @transform_4, window_bounds = array<i64: 1, 128>}, {pipeline_mode = #tpu.pipeline_mode<synchronous>, transform_indices = @transform_5, window_bounds = array<i64: 128, 128>}, {pipeline_mode = #tpu.pipeline_mode<synchronous>, transform_indices = @transform_6, window_bounds = array<i64: 1, 128>}, {transform_indices = @transform_7, window_bounds = array<i64: 24, 128>}]} {
    %c0 = arith.constant 0 : index
    %c0_0 = arith.constant 0 : index
    %0 = vector.load %arg1[%c0, %c0_0] : memref<24x17xf32, #tpu.memory_space<vmem>>, vector<24x17xf32>
    %c0_1 = arith.constant 0 : index
    %c0_2 = arith.constant 0 : index
    %1 = vector.load %arg2[%c0_1, %c0_2] : memref<17x128xf32, #tpu.memory_space<vmem>>, vector<17x128xf32>
    %cst = arith.constant dense<0.000000e+00> : vector<24x128xf32>
    %2 = tpu.matmul %0, %1, %cst {dimension_numbers = #tpu.dot_dimension_numbers<[1], [0], [0], [1], [0, 0, 1, 1], [], []>} : vector<24x17xf32>, vector<17x128xf32>, vector<24x128xf32> -> vector<24x128xf32>
    %c0_3 = arith.constant 0 : index
    %c0_4 = arith.constant 0 : index
    %3 = vector.load %arg3[%c0_3, %c0_4] : memref<1x128xf32, #tpu.memory_space<vmem>>, vector<1x128xf32>
    %4 = vector.broadcast %3 : vector<1x128xf32> to vector<24x128xf32>
    %5 = arith.addf %2, %4 : vector<24x128xf32>
    %6 = math.tanh %5 : vector<24x128xf32>
    %c0_5 = arith.constant 0 : index
    %c0_6 = arith.constant 0 : index
    %7 = vector.load %arg4[%c0_5, %c0_6] : memref<128x128xf32, #tpu.memory_space<vmem>>, vector<128x128xf32>
    %cst_7 = arith.constant dense<0.000000e+00> : vector<24x128xf32>
    %8 = tpu.matmul %6, %7, %cst_7 {dimension_numbers = #tpu.dot_dimension_numbers<[1], [0], [0], [1], [0, 0, 1, 1], [], []>} : vector<24x128xf32>, vector<128x128xf32>, vector<24x128xf32> -> vector<24x128xf32>
    %c0_8 = arith.constant 0 : index
    %c0_9 = arith.constant 0 : index
    %9 = vector.load %arg5[%c0_8, %c0_9] : memref<1x128xf32, #tpu.memory_space<vmem>>, vector<1x128xf32>
    %10 = vector.broadcast %9 : vector<1x128xf32> to vector<24x128xf32>
    %11 = arith.addf %8, %10 : vector<24x128xf32>
    %12 = math.tanh %11 : vector<24x128xf32>
    %c0_10 = arith.constant 0 : index
    %c0_11 = arith.constant 0 : index
    %13 = vector.load %arg6[%c0_10, %c0_11] : memref<128x128xf32, #tpu.memory_space<vmem>>, vector<128x128xf32>
    %cst_12 = arith.constant dense<0.000000e+00> : vector<24x128xf32>
    %14 = tpu.matmul %12, %13, %cst_12 {dimension_numbers = #tpu.dot_dimension_numbers<[1], [0], [0], [1], [0, 0, 1, 1], [], []>} : vector<24x128xf32>, vector<128x128xf32>, vector<24x128xf32> -> vector<24x128xf32>
    %c0_13 = arith.constant 0 : index
    %c0_14 = arith.constant 0 : index
    %15 = vector.load %arg7[%c0_13, %c0_14] : memref<1x128xf32, #tpu.memory_space<vmem>>, vector<1x128xf32>
    %16 = vector.broadcast %15 : vector<1x128xf32> to vector<24x128xf32>
    %17 = arith.addf %14, %16 : vector<24x128xf32>
    %c0_15 = arith.constant 0 : index
    %c0_16 = arith.constant 0 : index
    %18 = vector.load %arg8[%c0_15, %c0_16] : memref<24x128xf32, #tpu.memory_space<vmem>>, vector<24x128xf32>
    tpu.vector_store %arg8[%c0_15, %c0_16], %17 {strides = array<i32>} : memref<24x128xf32, #tpu.memory_space<vmem>>, vector<24x128xf32>,
    return
  }
  func.func @transform_0(%arg0: i32) -> (i32, i32) {
    %c0_i32 = arith.constant 0 : i32
    %c0_i32_0 = arith.constant 0 : i32
    return %arg0, %c0_i32 : i32, i32
  }
  func.func @transform_1(%arg0: i32) -> (i32, i32) {
    %c0_i32 = arith.constant 0 : i32
    %c0_i32_0 = arith.constant 0 : i32
    %c0_i32_1 = arith.constant 0 : i32
    return %c0_i32, %c0_i32_0 : i32, i32
  }
  func.func @transform_2(%arg0: i32) -> (i32, i32) {
    %c0_i32 = arith.constant 0 : i32
    %c0_i32_0 = arith.constant 0 : i32
    %c0_i32_1 = arith.constant 0 : i32
    return %c0_i32, %c0_i32_0 : i32, i32
  }
  func.func @transform_3(%arg0: i32) -> (i32, i32) {
    %c0_i32 = arith.constant 0 : i32
    %c0_i32_0 = arith.constant 0 : i32
    %c0_i32_1 = arith.constant 0 : i32
    return %c0_i32, %c0_i32_0 : i32, i32
  }
  func.func @transform_4(%arg0: i32) -> (i32, i32) {
    %c0_i32 = arith.constant 0 : i32
    %c0_i32_0 = arith.constant 0 : i32
    %c0_i32_1 = arith.constant 0 : i32
    return %c0_i32, %c0_i32_0 : i32, i32
  }
  func.func @transform_5(%arg0: i32) -> (i32, i32) {
    %c0_i32 = arith.constant 0 : i32
    %c0_i32_0 = arith.constant 0 : i32
    %c0_i32_1 = arith.constant 0 : i32
    return %c0_i32, %c0_i32_0 : i32, i32
  }
  func.func @transform_6(%arg0: i32) -> (i32, i32) {
    %c0_i32 = arith.constant 0 : i32
    %c0_i32_0 = arith.constant 0 : i32
    %c0_i32_1 = arith.constant 0 : i32
    return %c0_i32, %c0_i32_0 : i32, i32
  }
  func.func @transform_7(%arg0: i32) -> (i32, i32) {
    %c0_i32 = arith.constant 0 : i32
    %c0_i32_0 = arith.constant 0 : i32
    return %arg0, %c0_i32 : i32, i32
  }
}

</mosaic_0001>

<bundles_post_ra>
// kernel: dueling_dqn_forward.1
= control target key start
LH: loop header
LB: loop body
LE: loop exit
PB: predicated region body
PF: predicated region fallthrough
CT: control target
= control target key end

     0   :  { %12 = vsyncpa [#allocation3], 0  ;;  %s411_s0 = inlined_call_operand.vmem [shape: f32[24,17], index: 0, kind: input, shape index: {}]   ;;  %s412_s1 = inlined_call_operand.vmem [shape: f32[17,128], index: 1, kind: input, shape index: {}]   ;;  %s413_s2 = inlined_call_operand.vmem [shape: f32[1,128], index: 2, kind: input, shape index: {}]   ;;  %s414_s3 = inlined_call_operand.hbm [shape: f32[128,128], index: 3, kind: input, shape index: {}]   ;;  %s415_s4 = inlined_call_operand.vmem [shape: f32[1,128], index: 4, kind: input, shape index: {}]   ;;  %s416_s5 = inlined_call_operand.hbm [shape: f32[128,128], index: 5, kind: input, shape index: {}]   ;;  %s417_s6 = inlined_call_operand.vmem [shape: f32[1,128], index: 6, kind: input, shape index: {}]   ;;  %s418_s7 = inlined_call_operand.vmem [shape: f32[24,128], index: 7, kind: output, shape index: {}]  }
   0x1   :  { %s24_s26 = sshll.u32 %s414_s3, 4  ;;  %s25_s26 = int_to_ptr.hbm [resolvable:$true] %s24_s26 }
   0x2   :  { %13 = vsyncpa [#allocation5], 0  ;;  %s322_s27 = smov [#allocation2]   ;;  %s39_s8 = sshll.u32 %s416_s5, 4  ;;  %s40_s8 = int_to_ptr.hbm [resolvable:$true] %s39_s8 }
   0x3   :  { %s26_s28 = sshll.u32 %s322_s27, 4  ;;  %s323_s9 = smov 128   ;;  %s27_s28 = int_to_ptr.vmem [resolvable:$true] %s26_s28 }
   0x4   :  { %s324_s10 = smov 8   ;;  %s325_s11 = smov [#allocation4]  }
   0x5   :  { %32 = dma.hbm_to_vmem [thread:$0]  %s25_s26, 2048, %s27_s28, [#allocation3], %s323_s9, %s323_s9, %s324_s10  }
   0x6   :  { %s41_s12 = sshll.u32 %s325_s11, 4  ;;  %s42_s12 = int_to_ptr.vmem [resolvable:$true] %s41_s12 }
   0x7   :  { %47 = dma.hbm_to_vmem [thread:$0]  %s40_s8, 2048, %s42_s12, [#allocation5], %s323_s9, %s323_s9, %s324_s10  }
   0x8   :  { %318 = dma.done.wait [#allocation3], 2048  }
   0x9   :  { %319 = vsyncadd [#allocation3], 4294965248 }
   0xa   :  { %320 = dma.done.wait [#allocation5], 2048  }
   0xb   :  { %321 = vsyncadd [#allocation5], 4294965248  ;;  %vm78_vm0 = vcmask 1040384   ;;  %v63_v0 = vld [vmem:[%s412_s1 + $0x10] sm:$0x1]  ;;  %v62_v1 = vld [vmem:[%s412_s1 + $0x8] sm:$0xff] }
   0xc   :  { %215 = vmatpush.msk.msra.mxu0 %vm78_vm0, %v63_v0  ;;  %v61_v2 = vld [vmem:[%s412_s1] sm:$0xff]  ;;  %v126_v3 = vld [vmem:[#allocation2 + $0x78] sm:$0xff]  ;;  %v125_v4 = vld [vmem:[#allocation2 + $0x70] sm:$0xff]  ;;  %vm68_vm1 = vcmask 138240  }
   0xd   :  { %v58_v5 = vld [vmem:[%s411_s0] sm:$0xff]  ;;  %131 = vmatpush.msra.mxu1 %v126_v3  ;;  %v124_v6 = vld [vmem:[#allocation2 + $0x68] sm:$0xff]  ;;  %219 = vmatpush.msra.mxu3 %v126_v3  ;;  %v122_v8 = vld [vmem:[#allocation2 + $0x58] sm:$0xff] }
   0xe   :  { %96 = vmatpush.msra.mxu0 %v62_v1  ;;  %v123_v7 = vld [vmem:[#allocation2 + $0x60] sm:$0xff]  ;;  %v121_v9 = vld [vmem:[#allocation2 + $0x50] sm:$0xff]  ;;  %v59_v10 = vld [vmem:[%s411_s0 + $0x8] sm:$0xff] }
   0xf   :  { %132 = vmatpush.msra.mxu1 %v125_v4  ;;  %220 = vmatpush.msra.mxu3 %v125_v4  ;;  %v120_v11 = vld [vmem:[#allocation2 + $0x48] sm:$0xff]  ;;  %v119_v12 = vld [vmem:[#allocation2 + $0x40] sm:$0xff]  ;;  %v118_v13 = vld [vmem:[#allocation2 + $0x38] sm:$0xff] }
  0x10   :  { %97 = vmatpush.msra.mxu0 %v61_v2  ;;  %v117_v14 = vld [vmem:[#allocation2 + $0x30] sm:$0xff]  ;;  %v116_v16 = vld [vmem:[#allocation2 + $0x28] sm:$0xff]  ;;  %v115_v17 = vld [vmem:[#allocation2 + $0x20] sm:$0xff] }
  0x11   :  { %216 = vmatmul.msk.f32.vlgmr.msra.gmra.mxu0 %vm68_vm1, %v58_v5  ;;  %133 = vmatpush.msra.mxu1 %v124_v6  ;;  %v60_v15 = vld [vmem:[%s411_s0 + $0x10] sm:$0xff]  ;;  %v114_v18 = vld [vmem:[#allocation2 + $0x18] sm:$0xff]  ;;  %v112_v20 = vld [vmem:[#allocation2 + $0x8] sm:$0xff] }
  0x12   :  { %221 = vmatpush.msra.mxu3 %v124_v6  ;;  %v113_v19 = vld [vmem:[#allocation2 + $0x10] sm:$0xff]  ;;  %v111_v21 = vld [vmem:[#allocation2] sm:$0xff]  ;;  %v175_v22 = vld [vmem:[#allocation4 + $0x78] sm:$0xff] }
  0x13   :  { %134 = vmatpush.msra.mxu1 %v123_v7  ;;  %v174_v23 = vld [vmem:[#allocation4 + $0x70] sm:$0xff]  ;;  %180 = vmatpush.msrb.mxu0 %v175_v22  ;;  %v173_v24 = vld [vmem:[#allocation4 + $0x68] sm:$0xff]  ;;  %v255_v25 = vld [vmem:[%s413_s2] ss:$0 sm:$0xff] }
  0x14   :  { %222 = vmatpush.msra.mxu3 %v123_v7  ;;  %235 = vmatpush.msra.mxu2 %v175_v22  ;;  %v172_v26 = vld [vmem:[#allocation4 + $0x60] sm:$0xff]  ;;  %v171_v28 = vld [vmem:[#allocation4 + $0x58] sm:$0xff]  ;;  %v170_v30 = vld [vmem:[#allocation4 + $0x50] sm:$0xff] }
  0x15   :  { %135 = vmatpush.msra.mxu1 %v122_v8  ;;  %181 = vmatpush.msrb.mxu0 %v174_v23  ;;  %v169_v31 = vld [vmem:[#allocation4 + $0x48] sm:$0xff]  ;;  %v168_v32 = vld [vmem:[#allocation4 + $0x40] sm:$0xff]  ;;  %v167_v34 = vld [vmem:[#allocation4 + $0x38] sm:$0xff] }
  0x16   :  { %223 = vmatpush.msra.mxu3 %v122_v8  ;;  %236 = vmatpush.msra.mxu2 %v174_v23  ;;  %v166_v37 = vld [vmem:[#allocation4 + $0x30] sm:$0xff]  ;;  %v165_v38 = vld [vmem:[#allocation4 + $0x28] sm:$0xff]  ;;  %v164_v43 = vld [vmem:[#allocation4 + $0x20] sm:$0xff] }
  0x17   :  { %136 = vmatpush.msra.mxu1 %v121_v9  ;;  %182 = vmatpush.msrb.mxu0 %v173_v24  ;;  %v163_v44 = vld [vmem:[#allocation4 + $0x18] sm:$0xff]  ;;  %v162_v45 = vld [vmem:[#allocation4 + $0x10] sm:$0xff]  ;;  %v161_v46 = vld [vmem:[#allocation4 + $0x8] sm:$0xff] }
  0x18   :  { %224 = vmatpush.msra.mxu3 %v121_v9  ;;  %237 = vmatpush.msra.mxu2 %v173_v24  ;;  %v160_v47 = vld [vmem:[#allocation4] sm:$0xff] }
  0x19   :  { %217 = vmatmul.msk.f32.gmra.mxu0 %vm68_vm1, %v59_v10  ;;  %137 = vmatpush.msra.mxu1 %v120_v11  ;;  %v256_v48 = vld [vmem:[%s415_s4] ss:$0 sm:$0xff] }
  0x1a   :  { %225 = vmatpush.msra.mxu3 %v120_v11  ;;  %183 = vmatpush.msrb.mxu0 %v172_v26  ;;  %v257_v58 = vld [vmem:[%s417_s6] ss:$0 sm:$0xff] }
  0x1b   :  { %138 = vmatpush.msra.mxu1 %v119_v12  ;;  %238 = vmatpush.msra.mxu2 %v172_v26 }
  0x1c   :  { %226 = vmatpush.msra.mxu3 %v119_v12  ;;  %184 = vmatpush.msrb.mxu0 %v171_v28 }
  0x1d   :  { %139 = vmatpush.msra.mxu1 %v118_v13  ;;  %239 = vmatpush.msra.mxu2 %v171_v28 }
  0x1e   :  { %227 = vmatpush.msra.mxu3 %v118_v13  ;;  %185 = vmatpush.msrb.mxu0 %v170_v30 }
  0x1f   :  { %140 = vmatpush.msra.mxu1 %v117_v14  ;;  %240 = vmatpush.msra.mxu2 %v170_v30 }
  0x20   :  { %228 = vmatpush.msra.mxu3 %v117_v14  ;;  %186 = vmatpush.msrb.mxu0 %v169_v31 }
  0x21   :  { %218 = vmatmul.msk.f32.gmra.mxu0 %vm68_vm1, %v60_v15  ;;  %141 = vmatpush.msra.mxu1 %v116_v16 }
  0x22   :  { %229 = vmatpush.msra.mxu3 %v116_v16  ;;  %241 = vmatpush.msra.mxu2 %v169_v31 }
  0x23   :  { %142 = vmatpush.msra.mxu1 %v115_v17  ;;  %187 = vmatpush.msrb.mxu0 %v168_v32 }
  0x24   :  { %230 = vmatpush.msra.mxu3 %v115_v17  ;;  %242 = vmatpush.msra.mxu2 %v168_v32 }
  0x25   :  { %143 = vmatpush.msra.mxu1 %v114_v18  ;;  %188 = vmatpush.msrb.mxu0 %v167_v34 }
  0x26   :  { %231 = vmatpush.msra.mxu3 %v114_v18  ;;  %243 = vmatpush.msra.mxu2 %v167_v34 }
  0x27   :  { %144 = vmatpush.msra.mxu1 %v113_v19  ;;  %189 = vmatpush.msrb.mxu0 %v166_v37 }
  0x28   :  { %232 = vmatpush.msra.mxu3 %v113_v19  ;;  %244 = vmatpush.msra.mxu2 %v166_v37 }
  0x29   :  { %145 = vmatpush.msra.mxu1 %v112_v20  ;;  %190 = vmatpush.msrb.mxu0 %v165_v38 }
  0x2a   :  { %233 = vmatpush.msra.mxu3 %v112_v20  ;;  %245 = vmatpush.msra.mxu2 %v165_v38 }
  0x2b   :  { %146 = vmatpush.msra.mxu1 %v111_v21  ;;  %191 = vmatpush.msrb.mxu0 %v164_v43 }
  0x2c   :  { %234 = vmatpush.msra.mxu3 %v111_v21  ;;  %246 = vmatpush.msra.mxu2 %v164_v43 }
  0x2d   :  { %192 = vmatpush.msrb.mxu0 %v163_v44 }
  0x2e   :  { %247 = vmatpush.msra.mxu2 %v163_v44 }
  0x2f   :  { %193 = vmatpush.msrb.mxu0 %v162_v45 }
  0x30   :  { %248 = vmatpush.msra.mxu2 %v162_v45 }
  0x31   :  { %194 = vmatpush.msrb.mxu0 %v161_v46 }
  0x32   :  { %249 = vmatpush.msra.mxu2 %v161_v46 }
  0x33   :  { %195 = vmatpush.msrb.mxu0 %v160_v47 }
  0x34   :  { %250 = vmatpush.msra.mxu2 %v160_v47 }
  0x8e   :  { %v99_v27 = vpop.f32.mrf.mxu0 }
  0x8f   :  { %v100_v29 = vadd.f32 %v255_v25, %v99_v27 }
  0x91   :  { %258 = vtanh.f32 %v100_v29 }
  0x96   :  { %v102_v33 = vpop.f32.mrf.mxu0 }
  0x97   :  { %v259_v35 = vpop.eup %258  ;;  %v103_v36 = vadd.f32 %v255_v25, %v102_v33 }
  0x98   :  { %147 = vmatmul.f32.vlgmr.msra.gmra.mxu1 %v259_v35 }
  0x99   :  { %260 = vtanh.f32 %v103_v36 }
  0x9e   :  { %v105_v39 = vpop.f32.mrf.mxu0 }
  0x9f   :  { %v261_v40 = vpop.eup %260  ;;  %v106_v41 = vadd.f32 %v255_v25, %v105_v39 }
  0xa0   :  { %150 = vmatmul.f32.vlgmr.msra.gmra.mxu3 %v261_v40 }
  0xa1   :  { %262 = vtanh.f32 %v106_v41 }
  0xa7   :  { %v263_v42 = vpop.eup %262 }
  0xa8   :  { %153 = vmatmul.f32.gmra.mxu3 %v263_v42 }
 0x115   :  { %v148_v49 = vpop.f32.mrf.mxu1 }
 0x116   :  { %v149_v50 = vadd.f32 %v256_v48, %v148_v49 }
 0x118   :  { %264 = vtanh.f32 %v149_v50 }
 0x11e   :  { %v265_v51 = vpop.eup %264 }
 0x11f   :  { %196 = vmatmul.f32.vlgmr.msrb.gmra.mxu0 %v265_v51 }
 0x123   :  { %v151_v52 = vpop.f32.mrf.mxu3 }
 0x124   :  { %v152_v53 = vadd.f32 %v256_v48, %v151_v52 }
 0x126   :  { %266 = vtanh.f32 %v152_v53 }
 0x12b   :  { %v154_v54 = vpop.f32.mrf.mxu3 }
 0x12c   :  { %v267_v55 = vpop.eup %266  ;;  %v155_v56 = vadd.f32 %v256_v48, %v154_v54 }
 0x12d   :  { %199 = vmatmul.f32.vlgmr.msra.gmra.mxu2 %v267_v55 }
 0x12e   :  { %268 = vtanh.f32 %v155_v56 }
 0x134   :  { %v269_v57 = vpop.eup %268 }
 0x135   :  { %202 = vmatmul.f32.gmra.mxu2 %v269_v57 }
 0x19c   :  { %v197_v59 = vpop.f32.mrf.mxu0 }
 0x19d   :  { %v198_v60 = vadd.f32 %v257_v58, %v197_v59 }
 0x19f   :  { %206 = vst [vmem:[%s418_s7] sm:$0xff] %v198_v60 }
 0x1b0   :  { %v200_v61 = vpop.f32.mrf.mxu2 }
 0x1b1   :  { %v201_v62 = vadd.f32 %v257_v58, %v200_v61 }
 0x1b3   :  { %207 = vst [vmem:[%s418_s7 + $0x8] sm:$0xff] %v201_v62 }
 0x1b8   :  { %v203_v63 = vpop.f32.mrf.mxu2 }
 0x1b9   :  { %v204_v0 = vadd.f32 %v257_v58, %v203_v63 }
 0x1bb   :  { %208 = vst [vmem:[%s418_s7 + $0x10] sm:$0xff] %v204_v0 }
 0x1bc   :  { %213 = vsyncpa [#allocation3], 1 }
 0x1bd   :  { %214 = vsyncpa [#allocation5], 1 }

</bundles_post_ra>
